<compile_context>
chip_gen: v7x
topology: tpu7x:2x2x1
jax: 0.10.0
libtpu: 0.0.40
codegen_flags: <defaults>
</compile_context>

<pallas_src>
import functools

import numpy as np
import jax
import jax.numpy as jnp
from jax import lax
from jax.experimental import pallas as pl
from jax.experimental.pallas import tpu as pltpu


def _cbp_kernel(x1_ref, x2_ref, s1t_ref, s2_ref, o_ref, m_acc_ref, *, out_channels):
    """Grid = (batch, pixel_tiles).  Accumulate M = x1 @ x2^T per pixel tile, then
    at the last tile compute G = s1^T M s2 and reduce its modular anti-diagonals."""
    t = pl.program_id(1)
    D = out_channels

    @pl.when(t == 0)
    def _init():
        m_acc_ref[...] = jnp.zeros_like(m_acc_ref)

    # x refs are (C, TP) with the pixel axis lane-dense.  Contract over pixels on
    # the MXU: M[c1, c2] += sum_p x1[c1, p] * x2[c2, p].
    m_acc_ref[...] += lax.dot_general(
        x1_ref[...], x2_ref[...],
        dimension_numbers=(((1,), (1,)), ((), ())),
        preferred_element_type=jnp.float32)

    @pl.when(t == pl.num_programs(1) - 1)
    def _finalize():
        M = m_acc_ref[...]                                            # (C1, C2)
        # G = s1^T @ M @ s2 (s1 is passed pre-transposed -> plain matmuls).
        P = jnp.dot(M, s2_ref[...], preferred_element_type=jnp.float32)     # (C1, D)
        G = jnp.dot(s1t_ref[...], P, preferred_element_type=jnp.float32)    # (D, D)

        # out[d] = sum_k G[k, (d-k) % D]: roll row k right by k, then column-sum.
        # Per-row rolls are done with log2(D) static lane-rolls + per-row selects
        # (binary decomposition of k) -- fully vectorized, no per-k scalar loop.
        row_id = lax.broadcasted_iota(jnp.int32, (D, D), 0)
        W = G
        shift = 1
        while shift < D:
            s = shift % D
            rolled = jnp.concatenate([W[:, D - s:], W[:, :D - s]], axis=1)
            W = jnp.where((row_id & shift) != 0, rolled, W)
            shift *= 2
        acc = jnp.sum(W, axis=0, keepdims=True)                       # (1, D)

        # torch module multiplies by out_channels at the end.
        o_ref[...] = (acc * float(D)).astype(o_ref.dtype)


def compact_bilinear_pooling(x1, x2, sketch1, sketch2, out_channels, *, pixel_tile=512):
    """x1: (B, C1, H, W), x2: (B, C2, H, W) in NCHW.  Returns (B, out_channels).

    Implements CompactBilinearPooling2.forward with sum_pool=True.
    sketch1: (C1, D), sketch2: (C2, D) dense count-sketch matrices.
    """
    B, C1, H, W = x1.shape
    B2, C2, H2, W2 = x2.shape
    assert (B, H, W) == (B2, H2, W2)
    D = out_channels
    HW = H * W

    # NCHW -> (B, C, H*W): free reshape (no transpose / extra HBM pass).
    x1_p = x1.reshape(B, C1, HW)
    x2_p = x2.reshape(B, C2, HW)
    # Pre-transpose sketch1 once (tiny parameter) so the finalize is plain matmuls.
    s1_t = jnp.transpose(sketch1)        # (D, C1)

    pixel_tile = min(pixel_tile, HW)
    # TODO(synk): masked tail tile for HW not divisible by pixel_tile.
    assert HW % pixel_tile == 0, "spatial size must tile evenly"
    n_tiles = HW // pixel_tile

    kernel = functools.partial(_cbp_kernel, out_channels=D)
    out = pl.pallas_call(
        kernel,
        out_shape=jax.ShapeDtypeStruct((B, 1, D), jnp.float32),
        grid_spec=pltpu.PrefetchScalarGridSpec(
            num_scalar_prefetch=0,
            grid=(B, n_tiles),
            in_specs=[
                pl.BlockSpec((None, C1, pixel_tile), lambda b, t: (b, 0, t)),
                pl.BlockSpec((None, C2, pixel_tile), lambda b, t: (b, 0, t)),
                pl.BlockSpec((D, C1), lambda b, t: (0, 0)),   # s1^T (constant block)
                pl.BlockSpec((C2, D), lambda b, t: (0, 0)),   # s2   (constant block)
            ],
            out_specs=pl.BlockSpec((None, 1, D), lambda b, t: (b, 0, 0)),
            scratch_shapes=[pltpu.VMEM((C1, C2), jnp.float32)],
        ),
        compiler_params=pltpu.CompilerParams(
            dimension_semantics=("parallel", "arbitrary"),
            vmem_limit_bytes=32 * 1024 * 1024),
    )(x1_p, x2_p, s1_t, sketch2)
    return out.reshape(B, D)


def make_tensor_sketch(key, in_channels, out_channels):
    """Dense count-sketch matrix: one +/-1 entry per row (as in the torch __init__)."""
    kh, ks = jax.random.split(key)
    rand_h = jax.random.randint(kh, (in_channels,), 0, out_channels)
    rand_s = 2.0 * jax.random.randint(ks, (in_channels,), 0, 2).astype(jnp.float32) - 1.0
    sketch = jnp.zeros((in_channels, out_channels), jnp.float32)
    sketch = sketch.at[jnp.arange(in_channels), rand_h].set(rand_s)
    return sketch


def reference_cbp(x1, x2, s1, s2, D):
    """Host-side float64 reference matching the torch forward (rfft/irfft based)."""
    x1 = np.asarray(x1, np.float64)
    x2 = np.asarray(x2, np.float64)
    s1 = np.asarray(s1, np.float64)
    s2 = np.asarray(s2, np.float64)
    y1 = np.einsum("bchw,cd->bhwd", x1, s1)
    y2 = np.einsum("bchw,cd->bhwd", x2, s2)
    cbp = np.fft.irfft(np.fft.rfft(y1, axis=-1) * np.fft.rfft(y2, axis=-1),
                       n=D, axis=-1) * D
    return cbp.sum(axis=(1, 2))


if __name__ == "__main__":
    B, C1, C2, H, W, D = 2, 8, 8, 32, 32, 128
    key = jax.random.PRNGKey(0)
    k1, k2, k3, k4 = jax.random.split(key, 4)

    x1 = jax.random.normal(k1, (B, C1, H, W), jnp.float32)
    x2 = jax.random.normal(k2, (B, C2, H, W), jnp.float32)
    s1 = make_tensor_sketch(k3, C1, D)  # tensor_sketch1: (in_channels1, out_channels)
    s2 = make_tensor_sketch(k4, C2, D)  # tensor_sketch2: (in_channels2, out_channels)

    out = compact_bilinear_pooling(x1, x2, s1, s2, D)
    out = jax.block_until_ready(out)

    ref = reference_cbp(x1, x2, s1, s2, D)
    assert out.shape == (B, D)
    np.testing.assert_allclose(np.asarray(out), ref, rtol=1e-3, atol=5e-2)

    print("KERNEL_OK")
</pallas_src>

<mosaic_0001>
module attributes {stable_mosaic.version = 11 : i64} {
  func.func @_cbp_kernel(%arg0: i32, %arg1: i32, %arg2: memref<1x8x512xf32, #tpu.memory_space<vmem>>, %arg3: memref<1x8x512xf32, #tpu.memory_space<vmem>>, %arg4: memref<128x8xf32, #tpu.memory_space<vmem>>, %arg5: memref<8x128xf32, #tpu.memory_space<vmem>>, %arg6: memref<1x1x128xf32, #tpu.memory_space<vmem>>, %arg7: memref<8x8xf32, #tpu.memory_space<vmem>>) attributes {dimension_semantics = [#tpu.dimension_semantics<parallel>, #tpu.dimension_semantics<arbitrary>], iteration_bounds = array<i64: 2, 2>, scalar_prefetch = 0 : i64, scratch_operands = 1 : i64, tpu.core_type = #tpu.core_type<tc>, window_params = [{transform_indices = @transform_0, window_bounds = array<i64: 1, 8, 512>}, {transform_indices = @transform_1, window_bounds = array<i64: 1, 8, 512>}, {pipeline_mode = #tpu.pipeline_mode<synchronous>, transform_indices = @transform_2, window_bounds = array<i64: 128, 8>}, {pipeline_mode = #tpu.pipeline_mode<synchronous>, transform_indices = @transform_3, window_bounds = array<i64: 8, 128>}, {transform_indices = @transform_4, window_bounds = array<i64: 1, 1, 128>}]} {
    %c0_i32 = arith.constant 0 : i32
    %0 = arith.cmpi eq, %arg1, %c0_i32 : i32
    %1 = arith.extui %0 : i1 to i32
    %c0_i32_0 = arith.constant 0 : i32
    %2 = arith.cmpi ne, %1, %c0_i32_0 : i32
    scf.if %2 {
      %cst_11 = arith.constant 0.000000e+00 : f32
      %14 = vector.broadcast %cst_11 : f32 to vector<8x8xf32>
      %c0_12 = arith.constant 0 : index
      %c0_13 = arith.constant 0 : index
      %15 = vector.load %arg7[%c0_12, %c0_13] : memref<8x8xf32, #tpu.memory_space<vmem>>, vector<8x8xf32>
      tpu.vector_store %arg7[%c0_12, %c0_13], %14 {strides = array<i32>} : memref<8x8xf32, #tpu.memory_space<vmem>>, vector<8x8xf32>,
    } else {
    }
    %c0 = arith.constant 0 : index
    %c0_1 = arith.constant 0 : index
    %3 = vector.load %arg7[%c0, %c0_1] : memref<8x8xf32, #tpu.memory_space<vmem>>, vector<8x8xf32>
    %c0_2 = arith.constant 0 : index
    %c0_3 = arith.constant 0 : index
    %c0_4 = arith.constant 0 : index
    %4 = vector.load %arg2[%c0_2, %c0_3, %c0_4] : memref<1x8x512xf32, #tpu.memory_space<vmem>>, vector<1x8x512xf32>
    %5 = vector.shape_cast %4 : vector<1x8x512xf32> to vector<8x512xf32>
    %c0_5 = arith.constant 0 : index
    %c0_6 = arith.constant 0 : index
    %c0_7 = arith.constant 0 : index
    %6 = vector.load %arg3[%c0_5, %c0_6, %c0_7] : memref<1x8x512xf32, #tpu.memory_space<vmem>>, vector<1x8x512xf32>
    %7 = vector.shape_cast %6 : vector<1x8x512xf32> to vector<8x512xf32>
    %cst = arith.constant dense<0.000000e+00> : vector<8x8xf32>
    %8 = tpu.matmul %5, %7, %cst {dimension_numbers = #tpu.dot_dimension_numbers<[1], [1], [0], [0], [0, 0, 1, 0], [], []>} : vector<8x512xf32>, vector<8x512xf32>, vector<8x8xf32> -> vector<8x8xf32>
    %9 = arith.addf %3, %8 : vector<8x8xf32>
    %c0_8 = arith.constant 0 : index
    %c0_9 = arith.constant 0 : index
    %10 = vector.load %arg7[%c0_8, %c0_9] : memref<8x8xf32, #tpu.memory_space<vmem>>, vector<8x8xf32>
    tpu.vector_store %arg7[%c0_8, %c0_9], %9 {strides = array<i32>} : memref<8x8xf32, #tpu.memory_space<vmem>>, vector<8x8xf32>,
    %c1_i32 = arith.constant 1 : i32
    %11 = arith.cmpi eq, %arg1, %c1_i32 : i32
    %12 = arith.extui %11 : i1 to i32
    %c0_i32_10 = arith.constant 0 : i32
    %13 = arith.cmpi ne, %12, %c0_i32_10 : i32
    scf.if %13 {
      %c0_11 = arith.constant 0 : index
      %c0_12 = arith.constant 0 : index
      %14 = vector.load %arg7[%c0_11, %c0_12] : memref<8x8xf32, #tpu.memory_space<vmem>>, vector<8x8xf32>
      %c0_13 = arith.constant 0 : index
      %c0_14 = arith.constant 0 : index
      %15 = vector.load %arg5[%c0_13, %c0_14] : memref<8x128xf32, #tpu.memory_space<vmem>>, vector<8x128xf32>
      %cst_15 = arith.constant dense<0.000000e+00> : vector<8x128xf32>
      %16 = tpu.matmul %14, %15, %cst_15 {dimension_numbers = #tpu.dot_dimension_numbers<[1], [0], [0], [1], [0, 0, 1, 1], [], []>} : vector<8x8xf32>, vector<8x128xf32>, vector<8x128xf32> -> vector<8x128xf32>
      %c0_16 = arith.constant 0 : index
      %c0_17 = arith.constant 0 : index
      %17 = vector.load %arg4[%c0_16, %c0_17] : memref<128x8xf32, #tpu.memory_space<vmem>>, vector<128x8xf32>
      %cst_18 = arith.constant dense<0.000000e+00> : vector<128x128xf32>
      %18 = tpu.matmul %17, %16, %cst_18 {dimension_numbers = #tpu.dot_dimension_numbers<[1], [0], [0], [1], [0, 0, 1, 1], [], []>} : vector<128x8xf32>, vector<8x128xf32>, vector<128x128xf32> -> vector<128x128xf32>
      %19 = tpu.iota {dimensions = array<i32: 0>} : vector<128x128xi32>
      %20 = vector.extract_strided_slice %18 {offsets = [0, 127], sizes = [128, 1], strides = [1, 1]} : vector<128x128xf32> to vector<128x1xf32>
      %21 = vector.extract_strided_slice %18 {offsets = [0, 0], sizes = [128, 127], strides = [1, 1]} : vector<128x128xf32> to vector<128x127xf32>
      %22 = tpu.concatenate %20, %21 in 1 : vector<128x1xf32>, vector<128x127xf32> -> vector<128x128xf32>
      %c1_i32_19 = arith.constant 1 : i32
      %23 = vector.broadcast %c1_i32_19 : i32 to vector<128x128xi32>
      %24 = arith.andi %19, %23 : vector<128x128xi32>
      %c0_i32_20 = arith.constant 0 : i32
      %25 = vector.broadcast %c0_i32_20 : i32 to vector<128x128xi32>
      %26 = arith.cmpi ne, %24, %25 : vector<128x128xi32>
      %27 = arith.select %26, %22, %18 : vector<128x128xi1>, vector<128x128xf32>
      %28 = vector.extract_strided_slice %27 {offsets = [0, 126], sizes = [128, 2], strides = [1, 1]} : vector<128x128xf32> to vector<128x2xf32>
      %29 = vector.extract_strided_slice %27 {offsets = [0, 0], sizes = [128, 126], strides = [1, 1]} : vector<128x128xf32> to vector<128x126xf32>
      %30 = tpu.concatenate %28, %29 in 1 : vector<128x2xf32>, vector<128x126xf32> -> vector<128x128xf32>
      %c2_i32 = arith.constant 2 : i32
      %31 = vector.broadcast %c2_i32 : i32 to vector<128x128xi32>
      %32 = arith.andi %19, %31 : vector<128x128xi32>
      %c0_i32_21 = arith.constant 0 : i32
      %33 = vector.broadcast %c0_i32_21 : i32 to vector<128x128xi32>
      %34 = arith.cmpi ne, %32, %33 : vector<128x128xi32>
      %35 = arith.select %34, %30, %27 : vector<128x128xi1>, vector<128x128xf32>
      %36 = vector.extract_strided_slice %35 {offsets = [0, 124], sizes = [128, 4], strides = [1, 1]} : vector<128x128xf32> to vector<128x4xf32>
      %37 = vector.extract_strided_slice %35 {offsets = [0, 0], sizes = [128, 124], strides = [1, 1]} : vector<128x128xf32> to vector<128x124xf32>
      %38 = tpu.concatenate %36, %37 in 1 : vector<128x4xf32>, vector<128x124xf32> -> vector<128x128xf32>
      %c4_i32 = arith.constant 4 : i32
      %39 = vector.broadcast %c4_i32 : i32 to vector<128x128xi32>
      %40 = arith.andi %19, %39 : vector<128x128xi32>
      %c0_i32_22 = arith.constant 0 : i32
      %41 = vector.broadcast %c0_i32_22 : i32 to vector<128x128xi32>
      %42 = arith.cmpi ne, %40, %41 : vector<128x128xi32>
      %43 = arith.select %42, %38, %35 : vector<128x128xi1>, vector<128x128xf32>
      %44 = vector.extract_strided_slice %43 {offsets = [0, 120], sizes = [128, 8], strides = [1, 1]} : vector<128x128xf32> to vector<128x8xf32>
      %45 = vector.extract_strided_slice %43 {offsets = [0, 0], sizes = [128, 120], strides = [1, 1]} : vector<128x128xf32> to vector<128x120xf32>
      %46 = tpu.concatenate %44, %45 in 1 : vector<128x8xf32>, vector<128x120xf32> -> vector<128x128xf32>
      %c8_i32 = arith.constant 8 : i32
      %47 = vector.broadcast %c8_i32 : i32 to vector<128x128xi32>
      %48 = arith.andi %19, %47 : vector<128x128xi32>
      %c0_i32_23 = arith.constant 0 : i32
      %49 = vector.broadcast %c0_i32_23 : i32 to vector<128x128xi32>
      %50 = arith.cmpi ne, %48, %49 : vector<128x128xi32>
      %51 = arith.select %50, %46, %43 : vector<128x128xi1>, vector<128x128xf32>
      %52 = vector.extract_strided_slice %51 {offsets = [0, 112], sizes = [128, 16], strides = [1, 1]} : vector<128x128xf32> to vector<128x16xf32>
      %53 = vector.extract_strided_slice %51 {offsets = [0, 0], sizes = [128, 112], strides = [1, 1]} : vector<128x128xf32> to vector<128x112xf32>
      %54 = tpu.concatenate %52, %53 in 1 : vector<128x16xf32>, vector<128x112xf32> -> vector<128x128xf32>
      %c16_i32 = arith.constant 16 : i32
      %55 = vector.broadcast %c16_i32 : i32 to vector<128x128xi32>
      %56 = arith.andi %19, %55 : vector<128x128xi32>
      %c0_i32_24 = arith.constant 0 : i32
      %57 = vector.broadcast %c0_i32_24 : i32 to vector<128x128xi32>
      %58 = arith.cmpi ne, %56, %57 : vector<128x128xi32>
      %59 = arith.select %58, %54, %51 : vector<128x128xi1>, vector<128x128xf32>
      %60 = vector.extract_strided_slice %59 {offsets = [0, 96], sizes = [128, 32], strides = [1, 1]} : vector<128x128xf32> to vector<128x32xf32>
      %61 = vector.extract_strided_slice %59 {offsets = [0, 0], sizes = [128, 96], strides = [1, 1]} : vector<128x128xf32> to vector<128x96xf32>
      %62 = tpu.concatenate %60, %61 in 1 : vector<128x32xf32>, vector<128x96xf32> -> vector<128x128xf32>
      %c32_i32 = arith.constant 32 : i32
      %63 = vector.broadcast %c32_i32 : i32 to vector<128x128xi32>
      %64 = arith.andi %19, %63 : vector<128x128xi32>
      %c0_i32_25 = arith.constant 0 : i32
      %65 = vector.broadcast %c0_i32_25 : i32 to vector<128x128xi32>
      %66 = arith.cmpi ne, %64, %65 : vector<128x128xi32>
      %67 = arith.select %66, %62, %59 : vector<128x128xi1>, vector<128x128xf32>
      %68 = vector.extract_strided_slice %67 {offsets = [0, 64], sizes = [128, 64], strides = [1, 1]} : vector<128x128xf32> to vector<128x64xf32>
      %69 = vector.extract_strided_slice %67 {offsets = [0, 0], sizes = [128, 64], strides = [1, 1]} : vector<128x128xf32> to vector<128x64xf32>
      %70 = tpu.concatenate %68, %69 in 1 : vector<128x64xf32>, vector<128x64xf32> -> vector<128x128xf32>
      %c64_i32 = arith.constant 64 : i32
      %71 = vector.broadcast %c64_i32 : i32 to vector<128x128xi32>
      %72 = arith.andi %19, %71 : vector<128x128xi32>
      %c0_i32_26 = arith.constant 0 : i32
      %73 = vector.broadcast %c0_i32_26 : i32 to vector<128x128xi32>
      %74 = arith.cmpi ne, %72, %73 : vector<128x128xi32>
      %75 = arith.select %74, %70, %67 : vector<128x128xi1>, vector<128x128xf32>
      %cst_27 = arith.constant dense<0.000000e+00> : vector<128xf32>
      %76 = vector.multi_reduction <add>, %75, %cst_27 [0] : vector<128x128xf32> to vector<128xf32>
      %77 = vector.shape_cast %76 : vector<128xf32> to vector<1x128xf32>
      %cst_28 = arith.constant 1.280000e+02 : f32
      %78 = vector.broadcast %cst_28 : f32 to vector<1x128xf32>
      %79 = arith.mulf %77, %78 : vector<1x128xf32>
      %c0_29 = arith.constant 0 : index
      %c0_30 = arith.constant 0 : index
      %c0_31 = arith.constant 0 : index
      %80 = vector.load %arg6[%c0_29, %c0_30, %c0_31] : memref<1x1x128xf32, #tpu.memory_space<vmem>>, vector<1x1x128xf32>
      %81 = vector.shape_cast %80 : vector<1x1x128xf32> to vector<1x128xf32>
      %82 = vector.shape_cast %79 : vector<1x128xf32> to vector<1x1x128xf32>
      tpu.vector_store %arg6[%c0_29, %c0_30, %c0_31], %82 {strides = array<i32>} : memref<1x1x128xf32, #tpu.memory_space<vmem>>, vector<1x1x128xf32>,
    } else {
    }
    return
  }
  func.func @transform_0(%arg0: i32, %arg1: i32) -> (i32, i32, i32) {
    %c0_i32 = arith.constant 0 : i32
    %c0_i32_0 = arith.constant 0 : i32
    return %arg0, %c0_i32, %arg1 : i32, i32, i32
  }
  func.func @transform_1(%arg0: i32, %arg1: i32) -> (i32, i32, i32) {
    %c0_i32 = arith.constant 0 : i32
    %c0_i32_0 = arith.constant 0 : i32
    return %arg0, %c0_i32, %arg1 : i32, i32, i32
  }
  func.func @transform_2(%arg0: i32, %arg1: i32) -> (i32, i32) {
    %c0_i32 = arith.constant 0 : i32
    %c0_i32_0 = arith.constant 0 : i32
    %c0_i32_1 = arith.constant 0 : i32
    return %c0_i32, %c0_i32_0 : i32, i32
  }
  func.func @transform_3(%arg0: i32, %arg1: i32) -> (i32, i32) {
    %c0_i32 = arith.constant 0 : i32
    %c0_i32_0 = arith.constant 0 : i32
    %c0_i32_1 = arith.constant 0 : i32
    return %c0_i32, %c0_i32_0 : i32, i32
  }
  func.func @transform_4(%arg0: i32, %arg1: i32) -> (i32, i32, i32) {
    %c0_i32 = arith.constant 0 : i32
    %c0_i32_0 = arith.constant 0 : i32
    %c0_i32_1 = arith.constant 0 : i32
    return %arg0, %c0_i32, %c0_i32_0 : i32, i32, i32
  }
}

</mosaic_0001>

<bundles_post_ra>
// kernel: tpu_custom_call.1
= control target key start
LH: loop header
LB: loop body
LE: loop exit
PB: predicated region body
PF: predicated region fallthrough
CT: control target
= control target key end

     0   :  { %9 = vsyncpa [#allocation4], 0  ;;  %s2653_s0 = inlined_call_operand.vmem [shape: f32[2,8,1024], index: 0, kind: input, shape index: {}]   ;;  %s2654_s1 = inlined_call_operand.hbm [shape: f32[2,8,1024], index: 1, kind: input, shape index: {}]   ;;  %s2655_s2 = inlined_call_operand.vmem [shape: f32[128,8], index: 2, kind: input, shape index: {}]   ;;  %s2656_s3 = inlined_call_operand.vmem [shape: f32[8,128], index: 3, kind: input, shape index: {}]   ;;  %s2657_s4 = inlined_call_operand.hbm [shape: f32[2,1,128], index: 4, kind: output, shape index: {}]  }
   0x1   :  { %11 = vsyncpa [#allocation4 + $0x1], 0 }
   0x2   :  { %12 = vsyncpa [#allocation5], 0 }
   0x3   :  { %14 = vsyncpa [#allocation5 + $0x1], 0  ;;  %s2037_s15 = smov 0   ;;  %s2039_s16 = smov 0  }
   0x4   :  { %s2041_s17 = smov 0   ;;  %s2043_s18 = smov 0  }
   0x5   :  { %s2045_s19 = smov 0   ;;  %s2047_s20 = smov 0  }
   0x6   :  { %s2049_s21 = smov 0   ;;  %s2051_s22 = smov 0  }
   0x7   :  { %s2053_s23 = smov 0   ;;  %s2055_s24 = smov 0  }
   0x8   :  { %s2057_s25 = smov 0  }
   0x9 LB: > { %2662 = sst [smem:[#allocation9_spill]] %s1978_s20  ;;  %s1647_s26 = sadd.s32 4294967295, %s1998_s25   ;;  %s1998_s25 = sphi %s2057_s25, %s20_s25   ;;  %s1994_s24 = sphi %s2055_s24, %s2687_s24   ;;  %s1990_s23 = sphi %s2053_s23, %s2686_s23   ;;  %s1986_s22 = sphi %s2051_s22, %s2685_s22   ;;  %s1982_s21 = sphi %s2049_s21, %s2684_s21   ;;  %s1978_s20 = sphi %s2047_s20, %s2676_s20   ;;  %s1974_s19 = sphi %s2045_s19, %s2683_s19   ;;  %s1970_s18 = sphi %s2043_s18, %s2682_s18   ;;  %s1966_s17 = sphi %s2041_s17, %s2681_s17   ;;  %s1962_s16 = sphi %s2039_s16, %s2680_s16   ;;  %s1958_s15 = sphi %s2037_s15, %s2679_s15  }
   0xa   : > { %s1648_s27 = sadd.s32 4294967294, %s1998_s25   ;;  %s29_s28 = sadd.s32 1, %s1990_s23 }
   0xb   : > { %s32_s29 = sadd.s32 1, %s1994_s24  ;;  %p30_p0 = scmp.ge.s32.totalorder %s29_s28, 2 }
   0xc   : > { %s69_s30 = sadd.s32 1, %s1978_s20  ;;  %p76_p1 = scmp.ne.s32.totalorder %s1978_s20, %s1974_s19 }
   0xd   : > { %p77_p2 = scmp.eq.s32.totalorder %s1998_s25, 0  ;;  %s2689_s28 = smov (%p30_p0, %s29_s28), 0 }
   0xe   : > { %2663 = sst [smem:[#allocation10_spill]] %s2689_s28  ;;  %s2691_s29 = smov (!%p30_p0, %s32_s29), %s1994_s24 }
   0xf   : > { %s65_s5 = ssub.s32 %s1990_s23, %s2689_s28  ;;  %p2103_p3 = por %p77_p2, %p76_p1 }
  0x10   : > { %p34_p4 = scmp.ge.s32.totalorder %s2691_s29, 2  ;;  %p82_p5 = scmp.ne.s32.totalorder %s1974_s19, %s1970_s18 }
  0x11   : > { %p83_p6 = scmp.eq.s32.totalorder %s1647_s26, 0  ;;  %s137_s7 = sadd.s32 1, %s1966_s17 }
  0x12   : > { %s2693_s29 = smov (%p34_p4, %s2691_s29), 0  ;;  %p147_p8 = scmp.ne.s32.totalorder %s1966_s17, %s1962_s16 }
  0x13   : > { %2665 = sst [smem:[#allocation11_spill]] %s2693_s29  ;;  %p2111_p7 = por %p83_p6, %p82_p5 }
  0x14   : > { %s64_s9 = ssub.s32 %s1994_s24, %s2693_s29  ;;  %p148_p9 = scmp.eq.s32.totalorder %s1647_s26, 3 }
  0x15   : > { %s66_s10 = sor.u32 %s65_s5, %s64_s9  ;;  %p135_p10 = scmp.eq.s32.totalorder %s64_s9, 0 }
  0x16   : > { %p67_p11 = scmp.eq.s32.totalorder %s66_s10, 0  ;;  %p2119_p12 = por %p148_p9, %p147_p8 }
  0x17   : > { %s2124_s12 = scalar_select %p135_p10, %s1966_s17, %s137_s7  }
  0x18   : > { %s2667_s11 = scalar_select %p2119_p12, 1, 0 }
  0x19   : > { %s2127_s13 = scalar_select %p67_p11, %s1978_s20, %s69_s30  }
  0x1a   : > { %p153_p13 = scmp.ne.s32.totalorder %s1962_s16, %s1958_s15  ;;  %p154_p0 = scmp.eq.s32.totalorder %s1648_s27, 3 }
  0x1b   : > { %2668 = sst [smem:[#allocation12_spill]] %s2127_s13  ;;  %p1746_p1 = scmp.lt.s32.totalorder %s1998_s25, 4 }
  0x1c   : > { %p2132_p2 = por %p154_p0, %p153_p13  ;;  %s193_s18 = sand.u32 1, %s1978_s20  }
  0x1d   : > { %s1651_s26 = sshll.u32 %s193_s18, 5  ;;  %s1652_s5 = sshll.u32 %s1990_s23, 2 }
  0x1e   : > { %s2669_s14 = scalar_select %p2132_p2, 1, 0 }
  0x1f   : > { %s1653_s9 = sshll.u32 %s1994_s24, 3  ;;  %s197_s10 = scalar_lea.vmem [#allocation3], %s1651_s26 }
  0x20   : > { %s207_s29 = sshll.u32 %s197_s10, 4  ;;  %s203_s28 = sadd.s32 %s1653_s9, %s1652_s5  ;;  %s2139_s29 = int_to_ptr.vmem [resolvable:$true] %s207_s29 }
  0x21   : > { %s1654_s30 = sshll.u32 %s203_s28, 7  ;;  %p2143_p4 = pnand %p1746_p1, %p2103_p3 }
  0x22   : > { %s2150_s20 = scalar_lea.hbm %s2654_s1, %s1654_s30  ;;  %s194_s26 = scalar_lea.sflag [#allocation4], %s193_s18 }
  0x23   : > { %s1846_s28 = scalar_lea.hbm %s2150_s20, 512  ;;  %p1848_p3 = pneg %p2143_p4 }
  0x24   : > { %p1847_p8 = scmp.ne.s32.totalorder %s2150_s20, %s1846_s28  ;;  %s1851_s5 = scalar_lea.hbm %s2654_s1, 2048 }
  0x25   : > { %p1852_p11 = scmp.lt.u32.totalorder %s2150_s20, %s2654_s1  ;;  %p1853_p13 = scmp.lt.u32.totalorder %s1851_s5, %s1846_s28 }
  0x26   : > { %p1849_p9 = pnand %p1848_p3, %p1847_p8  ;;  %p1855_p1 = scmp.lt.u32.totalorder %s1846_s28, %s2150_s20 }
  0x27   : > { %p1854_p0 = por %p1853_p13, %p1852_p11 }
  0x28   : > { %p1850_p10 = pneg %p1849_p9 }
  0x29   : > { %p1856_p5 = por %p1855_p1, %p1854_p0 }
  0x2b   : > { %p1857_p6 = pnand %p1856_p5, %p1850_p10 }
  0x2d   : > { %1860 = shalt.err (!%p1857_p6)
}
  0x2e   : > { %s1861_s18 = scalar_lea.vmem %s2139_s29, 512  ;;  %s2000_s30 = smov [#allocation3]  }
  0x2f   : > { %p1862_p8 = scmp.ne.s32.totalorder %s2139_s29, %s1861_s18  ;;  %s1866_s27 = sshll.u32 %s2000_s30, 4  ;;  %s1867_s27 = int_to_ptr.vmem [resolvable:$false] %s1866_s27 }
  0x30   : > { %s1868_s6 = scalar_lea.vmem %s1867_s27, 1024  ;;  %p1869_p12 = scmp.lt.s32.totalorder %s2139_s29, %s1867_s27 }
  0x31   : > { %p1864_p9 = pnand %p1862_p8, %p1848_p3  ;;  %p1870_p11 = scmp.lt.s32.totalorder %s1868_s6, %s1861_s18 }
  0x33   : > { %p1865_p2 = pneg %p1864_p9  ;;  %p1871_p13 = por %p1870_p11, %p1869_p12 }
  0x35   : > { %p1872_p0 = pnand %p1871_p13, %p1865_p2 }
  0x37   : > { %1875 = shalt.err (!%p1872_p0)
}
  0x38   : > { %1741 = dma.hbm_to_vmem [thread:$0]  (!%p2143_p4), %s2150_s20, 512, %s2139_s29, %s194_s26  }
  0x39   : > { %p2671_p5 = scmp.lt.s32.totalorder %s1998_s25, 5  ;;  %p2672_p6 = scmp.ge.s32.totalorder %s1998_s25, 1 }
  0x3b   : > { %p213_p3 = pnand %p2672_p6, %p2671_p5 }
  0x3c   : > { %s218_s28 = sand.u32 (!%p213_p3), 1, %s1974_s19  }
  0x3d   : > { %216 = sbr.rel (%p213_p3) target bundleno = 1601 (0x641), region = 36  ;;  %s1656_s13 = sshll.u32 (!%p213_p3), %s218_s28, 5 }
  0x3e   : > { %s219_s5 = scalar_lea.sflag (!%p213_p3), [#allocation4], %s218_s28  ;;  %s222_s9 = scalar_lea.vmem (!%p213_p3), [#allocation3], %s1656_s13 }
  0x44   : > { %1949 = dma.done.wait (%p2111_p7), %s219_s5, 512  }
  0x45   : > { %1951 = vsyncadd (%p2111_p7), %s219_s5, 4294966784  ;;  %s253_s20 = sand.u32 1, %s1962_s16   ;;  %s1657_s29 = sshll.u32 %s1982_s21, 2 }
  0x46   : > { %p256_p12 = scmp.lt.s32.totalorder %s1986_s22, 1  ;;  %p258_p2 = scmp.lt.s32.totalorder %s1657_s29, 7 }
  0x47   : > { %s2197_s8 = scalar_lea.vmem [#allocation6], %s253_s20  ;;  %p1660_p7 = scmp.ne.s32.totalorder %s1982_s21, 0 }
  0x48   : > { %s257_s7 = scalar_select %p256_p12, %s1986_s22, 1 }
  0x49   : > { %s2695_s29 = smov (!%p258_p2, %s1657_s29), 7  ;;  %269 = sbr.rel (%p1660_p7) target bundleno = 80 (0x50), region = 44 }
  0x4a   : > { %s1658_s26 = sshll.u32 %s257_s7, 3  ;;  %vm270_vm0 = vcmask (!%p1660_p7), 64512   ;;  %v2001_v0 = vmov (!%p1660_p7), 0.0  }
  0x4b   : > { %s261_s10 = sadd.s32 %s1658_s26, %s2695_s29  ;;  %271 = vst.msk [vmem:[#allocation2] sm:$0xff] (!%p1660_p7), %vm270_vm0, %v2001_v0 }
  0x4c   : > { %s1659_s18 = sshll.u32 %s261_s10, 3 }
  0x4d   : > { %s263_s6 = scalar_lea.vmem %s2653_s0, %s1659_s18 }
  0x50 PF: > { %v278_v1 = vld [vmem:[%s222_s9 + $0x8] sm:$0xff]  ;;  %v280_v2 = vld [vmem:[%s222_s9 + $0x18] sm:$0xff]  ;;  %v277_v3 = vld [vmem:[%s222_s9] sm:$0xff]  ;;  %vm422_vm1 = vcmask 64512   ;;  %p1661_p4 = scmp.ne.s32.totalorder %s1982_s21, 1 }
  0x51   : > { %281 = vmatprep.subr.mxu0 %v278_v1  ;;  %351 = vmatprep.subr.mxu1 %v280_v2  ;;  %v279_v4 = vld [vmem:[%s222_s9 + $0x10] sm:$0xff]  ;;  %v274_v5 = vld [vmem:[%s263_s6 + $0x8] sm:$0xff]  ;;  %v273_v7 = vld [vmem:[%s263_s6] sm:$0xff]  ;;  %v2002_v18 = vmov (!%p1661_p4), 0.0   ;;  %vm2003_vm2 = vmmov (!%p1661_p4), 0   ;;  %s2004_s10 = smov (!%p1661_p4), 1   ;;  %v712_v53 = vlaneseq (!%p1661_p4) }
  0x52   : > { %v276_v6 = vld [vmem:[%s263_s6 + $0x18] sm:$0xff]  ;;  %282 = vmatpush1.xpose.msra.mxu0 %v277_v3  ;;  %352 = vmatpush1.xpose.msra.mxu1 %v279_v4  ;;  %v275_v8 = vld [vmem:[%s263_s6 + $0x10] sm:$0xff]  ;;  %v272_v10 = vld [vmem:[#allocation2] sm:$0xff]  ;;  %s2005_s18 = smov (!%p1661_p4), 2   ;;  %s2006_s30 = smov (!%p1661_p4), 4  }
  0x53   : > { %345 = vmatprep.mubr.f32.mxu0 %v274_v5  ;;  %415 = vmatprep.mubr.f32.mxu1 %v276_v6  ;;  %v429_v16 = vld [vmem:[%s2656_s3] sm:$0xff] (!%p1661_p4)  ;;  %v509_v19 = vld [vmem:[%s2655_s2 + $0x30] sm:$0xff] (!%p1661_p4)  ;;  %v510_v22 = vld [vmem:[%s2655_s2 + $0x38] sm:$0xff] (!%p1661_p4)  ;;  %v2300_v54 = vshrl.u32 (!%p1661_p4), %v712_v53, 7  ;;  %s2007_s27 = smov (!%p1661_p4), 8   ;;  %s2008_s6 = smov (!%p1661_p4), 16  }
  0x54   : > { %1701 = vmatprep.subr.mxu0 (!%p1661_p4), %v2002_v18  ;;  %v503_v20 = vld [vmem:[%s2655_s2] sm:$0xff] (!%p1661_p4)  ;;  %v504_v23 = vld [vmem:[%s2655_s2 + $0x8] sm:$0xff] (!%p1661_p4)  ;;  %v505_v26 = vld [vmem:[%s2655_s2 + $0x10] sm:$0xff] (!%p1661_p4)  ;;  %s2009_s28 = smov (!%p1661_p4), 32   ;;  %s2010_s13 = smov (!%p1661_p4), 64  }
  0x55   : > { %346 = vmatmul.mubr.f32.vlgmr.msra.gmra.mrb[0].mxu0 %v273_v7  ;;  %416 = vmatmul.mubr.f32.vlgmr.msra.gmra.mrb[0].mxu1 %v275_v8  ;;  %v511_v25 = vld [vmem:[%s2655_s2 + $0x40] sm:$0xff] (!%p1661_p4)  ;;  %v512_v27 = vld [vmem:[%s2655_s2 + $0x48] sm:$0xff] (!%p1661_p4)  ;;  %v506_v28 = vld [vmem:[%s2655_s2 + $0x18] sm:$0xff] (!%p1661_p4)  ;;  %v2303_v55 = vadd.s32 (!%p1661_p4), 88, %v2300_v54  ;;  %v2307_v57 = vadd.s32 (!%p1661_p4), 104, %v2300_v54  ;;  %v2311_v59 = vadd.s32 (!%p1661_p4), 120, %v2300_v54 }
  0x56   : > { %1703 = vmatprep.mubr.msk.f32.mxu0 (!%p1661_p4), %vm2003_vm2, %v2002_v18  ;;  %1702 = vmatpush3.msra.mxu0 (!%p1661_p4), %v429_v16  ;;  %v513_v29 = vld [vmem:[%s2655_s2 + $0x50] sm:$0xff] (!%p1661_p4)  ;;  %v507_v30 = vld [vmem:[%s2655_s2 + $0x20] sm:$0xff] (!%p1661_p4)  ;;  %v514_v31 = vld [vmem:[%s2655_s2 + $0x58] sm:$0xff] (!%p1661_p4)  ;;  %v2323_v1 = vadd.s32 (!%p1661_p4), 56, %v2300_v54  ;;  %v2331_v7 = vadd.s32 (!%p1661_p4), 112, %v2300_v54  ;;  %v2354_v16 = vadd.s32 (!%p1661_p4), 40, %v2300_v54 }
  0x57   : > { %1717 = vmatprep.mubr.msk.f32.mxu1 (!%p1661_p4), %vm422_vm1, %v509_v19  ;;  %v508_v32 = vld [vmem:[%s2655_s2 + $0x28] sm:$0xff] (!%p1661_p4)  ;;  %v515_v33 = vld [vmem:[%s2655_s2 + $0x60] sm:$0xff] (!%p1661_p4)  ;;  %v517_v35 = vld [vmem:[%s2655_s2 + $0x70] sm:$0xff] (!%p1661_p4)  ;;  %v804_v56 = vand.u32 (!%p1661_p4), 1, %v2303_v55  ;;  %v806_v58 = vand.u32 (!%p1661_p4), 1, %v2307_v57  ;;  %v808_v62 = vand.u32 (!%p1661_p4), 1, %v2311_v59 }
  0x58   : > { %v516_v34 = vld [vmem:[%s2655_s2 + $0x68] sm:$0xff] (!%p1661_p4)  ;;  %v518_v36 = vld [vmem:[%s2655_s2 + $0x78] sm:$0xff] (!%p1661_p4)  ;;  %v800_v4 = vand.u32 (!%p1661_p4), 1, %v2323_v1  ;;  %v807_v8 = vand.u32 (!%p1661_p4), 1, %v2331_v7  ;;  %v919_v53 = vand.u32 (!%p1661_p4), 2, %v2331_v7 }
  0x59   : > { %vm820_vm3 = vcmp.ne.s32.totalorder (!%p1661_p4), %v804_v56, 0  ;;  %vm822_vm4 = vcmp.ne.s32.totalorder (!%p1661_p4), %v806_v58, 0  ;;  %vm824_vm5 = vcmp.ne.s32.totalorder (!%p1661_p4), %v808_v62, 0  ;;  %v2438_v62 = vadd.s32 (!%p1661_p4), 16, %v2300_v54 }
  0x5a   : > { %vm816_vm6 = vcmp.ne.s32.totalorder (!%p1661_p4), %v800_v4, 0  ;;  %vm823_vm7 = vcmp.ne.s32.totalorder (!%p1661_p4), %v807_v8, 0  ;;  %vm935_vm2 = vcmp.ne.s32.totalorder (!%p1661_p4), %v919_v53, 0 }
 0x127   : > { %427 = sbr.rel (%p1661_p4) target bundleno = 1576 (0x628), region = 48 }
 0x128   : > { %v347_v9 = vpop.f32.mrb[0].mxu0  ;;  %v417_v11 = vpop.f32.mrb[0].mxu1 }
 0x129   : > { %v418_v12 = vadd.f32 %v417_v11, %v347_v9  ;;  %v349_v13 = vpop.f32.mrb[1].mxu0  ;;  %v419_v14 = vpop.f32.mrb[1].mxu1  ;;  %v2337_v9 = vadd.s32 (!%p1661_p4), 24, %v2300_v54 }
 0x12b   : > { %v421_v15 = vadd.f32 %v418_v12, %v272_v10  ;;  %v796_v11 = vand.u32 (!%p1661_p4), 1, %v2337_v9 }
 0x12d   : > { %423 = vst.msk [vmem:[#allocation2] sm:$0xff] %vm422_vm1, %v421_v15  ;;  %vm812_vm8 = vcmp.ne.s32.totalorder (!%p1661_p4), %v796_v11, 0  ;;  %v920_v15 = vand.u32 (!%p1661_p4), 2, %v2311_v59 }
 0x12f   : > { %vm936_vm9 = vcmp.ne.s32.totalorder %v920_v15, 0 }
 0x134   : > { %v428_v17 = vld [vmem:[#allocation2] sm:$0xff] }
 0x135   : > { %1704 = vmatmul.mubr.msk.f32.vlgmr.msra.gmra.mrb[0].mxu0 %vm422_vm1, %v428_v17  ;;  %v798_v17 = vand.u32 1, %v2354_v16 }
 0x136   : > { %1708 = vmatprep.mubr.msk.f32.mxu0 %vm422_vm1, %v503_v20 }
 0x137   : > { %vm814_vm10 = vcmp.ne.s32.totalorder %v798_v17, 0  ;;  %v2462_v17 = vadd.s32 64, %v2300_v54 }
 0x208   : > { %v499_v21 = vpop.f32.mrb[0].mxu0 }
 0x209   : > { %v1705_v24 = vpop.f32.mrb[1].mxu0  ;;  %1706 = vmatprep.subr.mxu0 %v499_v21  ;;  %1732 = vmatprep.subr.mxu1 %v499_v21 }
 0x20a   : > { %1707 = vmatpush3.msra.mxu0 %v499_v21  ;;  %1733 = vmatpush3.msra.mxu1 %v499_v21  ;;  %v2362_v21 = vadd.s32 72, %v2300_v54 }
 0x20b   : > { %1718 = vmatmul.mubr.msk.f32.vlgmr.msra.gmra.mrb[0].mxu1 %vm422_vm1, %v510_v22  ;;  %1709 = vmatmul.mubr.msk.f32.vlgmr.msra.gmra.mrb[2].mxu0 %vm422_vm1, %v504_v23  ;;  %v2365_v22 = vadd.s32 48, %v2300_v54 }
 0x20c   : > { %1720 = vmatprep.mubr.msk.f32.mxu1 %vm422_vm1, %v511_v25  ;;  %1711 = vmatprep.mubr.msk.f32.mxu0 %vm422_vm1, %v505_v26  ;;  %v802_v25 = vand.u32 1, %v2362_v21 }
 0x20d   : > { %v799_v26 = vand.u32 1, %v2365_v22  ;;  %v911_v15 = vand.u32 2, %v2365_v22 }
 0x20e   : > { %vm818_vm11 = vcmp.ne.s32.totalorder %v802_v25, 0 }
 0x20f   : > { %1721 = vmatmul.mubr.msk.f32.gmra.mrb[2].mxu1 %vm422_vm1, %v512_v27  ;;  %1712 = vmatmul.mubr.msk.f32.gmra.mrb[4].mxu0 %vm422_vm1, %v506_v28  ;;  %vm815_vm12 = vcmp.ne.s32.totalorder %v799_v26, 0 }
 0x210   : > { %1723 = vmatprep.mubr.msk.f32.mxu1 %vm422_vm1, %v513_v29  ;;  %1714 = vmatprep.mubr.msk.f32.mxu0 %vm422_vm1, %v507_v30  ;;  %v916_v29 = vand.u32 2, %v2303_v55  ;;  %v912_v30 = vand.u32 2, %v2323_v1 }
 0x212   : > { %vm932_vm13 = vcmp.ne.s32.totalorder %v916_v29, 0  ;;  %vm928_vm14 = vcmp.ne.s32.totalorder %v912_v30, 0  ;;  %v1028_v30 = vand.u32 4, %v2303_v55  ;;  %v1030_v55 = vand.u32 4, %v2307_v57 }
 0x213   : > { %1724 = vmatmul.mubr.msk.f32.gmra.mrb[4].mxu1 %vm422_vm1, %v514_v31  ;;  %1715 = vmatmul.mubr.msk.f32.gmra.mrb[6].mxu0 %vm422_vm1, %v508_v32  ;;  %v2383_v31 = vadd.s32 80, %v2300_v54 }
 0x214   : > { %1726 = vmatprep.mubr.msk.f32.mxu1 %vm422_vm1, %v515_v33 }
 0x217   : > { %1727 = vmatmul.mubr.msk.f32.gmra.mrb[6].mxu1 %vm422_vm1, %v516_v34 }
 0x218   : > { %1729 = vmatprep.mubr.msk.f32.mxu1 %vm422_vm1, %v517_v35 }
 0x21b   : > { %1730 = vmatmul.mubr.msk.f32.gmra.mrb[8].mxu1 %vm422_vm1, %v518_v36  ;;  %v918_v36 = vand.u32 2, %v2307_v57 }
 0x21d   : > { %vm934_vm15 = vcmp.ne.s32.totalorder %v918_v36, 0 }
 0x2de   : > { %v1719_v37 = vpop.f32.mrb[0].mxu1  ;;  %v2270_v38 = vpop.f32.mrb[2].mxu0 }
 0x2df   : > { %v2272_v39 = vpop.f32.mrb[1].mxu1  ;;  %v2274_v40 = vpop.f32.mrb[3].mxu0 }
 0x2e2   : > { %v2276_v41 = vpop.f32.mrb[2].mxu1  ;;  %v1713_v42 = vpop.f32.mrb[4].mxu0 }
 0x2e3   : > { %v2278_v43 = vpop.f32.mrb[3].mxu1  ;;  %v2280_v44 = vpop.f32.mrb[5].mxu0 }
 0x2e6   : > { %v1725_v45 = vpop.f32.mrb[4].mxu1  ;;  %v2282_v46 = vpop.f32.mrb[6].mxu0 }
 0x2e7   : > { %767 = vrot.lane.b32.xlu1 %v1725_v45, %s2004_s10  ;;  %v2285_v47 = vpop.f32.mrb[5].mxu1  ;;  %v2296_v52 = vpop.f32.mrb[7].mxu0 }
 0x2ea   : > { %v1728_v48 = vpop.f32.mrb[6].mxu1 }
 0x2eb   : > { %771 = vrot.lane.b32.xlu1 %v1728_v48, %s2004_s10  ;;  %v2288_v49 = vpop.f32.mrb[7].mxu1 }
 0x2ee   : > { %v1731_v50 = vpop.f32.mrb[8].mxu1 }
 0x2ef   : > { %775 = vrot.lane.b32.xlu0 %v1731_v50, %s2004_s10  ;;  %v703_v51 = vpop.f32.mrb[9].mxu1 }
 0x2f3   : > { %759 = vrot.lane.b32.xlu0 %v1719_v37, %s2004_s10 }
 0x2f7   : > { %773 = vrot.lane.b32.xlu0 %v703_v51, %s2004_s10 }
 0x2fb   : > { %751 = vrot.lane.b32.xlu0 %v1713_v42, %s2004_s10 }
 0x2ff   : > { %757 = vrot.lane.b32.xlu0 %v2272_v39, %s2004_s10 }
 0x303   : > { %763 = vrot.lane.b32.xlu0 %v2276_v41, %s2004_s10 }
 0x359   : > { %v768_v60 = vpop.permute.xlu1 %767 }
 0x35a   : > { %v2313_v61 = vsel %vm820_vm3, %v768_v60, %v1725_v45 }
 0x35b   : > { %879 = vrot.lane.b32.xlu0 %v2313_v61, %s2005_s18 }
 0x35d   : > { %v772_v63 = vpop.permute.xlu1 %771 }
 0x35e   : > { %v2318_v0 = vsel %vm822_vm4, %v772_v63, %v1728_v48 }
 0x35f   : > { %883 = vrot.lane.b32.xlu0 %v2318_v0, %s2005_s18 }
 0x361   : > { %v776_v2 = vpop.permute.xlu0 %775 }
 0x362   : > { %v840_v3 = vsel %vm824_vm5, %v776_v2, %v1731_v50  ;;  %v2443_v2 = vadd.s32 32, %v2300_v54 }
 0x363   : > { %887 = vrot.lane.b32.xlu1 %v840_v3, %s2005_s18 }
 0x365   : > { %v760_v5 = vpop.permute.xlu0 %759 }
 0x366   : > { %v832_v6 = vsel %vm816_vm6, %v760_v5, %v1719_v37  ;;  %v803_v37 = vand.u32 1, %v2383_v31 }
 0x367   : > { %755 = vrot.lane.b32.xlu1 %v2282_v46, %s2004_s10 }
 0x368   : > { %vm819_vm0 = vcmp.ne.s32.totalorder %v803_v37, 0  ;;  %v1031_v37 = vand.u32 4, %v2331_v7 }
 0x369   : > { %v774_v10 = vpop.permute.xlu0 %773 }
 0x36a   : > { %v2342_v12 = vsel %vm823_vm7, %v774_v10, %v703_v51 }
 0x36b   : > { %871 = vrot.lane.b32.xlu1 %v832_v6, %s2005_s18 }
 0x36d   : > { %v752_v13 = vpop.permute.xlu0 %751 }
 0x36e   : > { %v2348_v14 = vsel %vm812_vm8, %v752_v13, %v1713_v42  ;;  %v2398_v42 = vadd.s32 96, %v2300_v54  ;;  %v910_v13 = vand.u32 2, %v2354_v16 }
 0x36f   : > { %765 = vrot.lane.b32.xlu1 %v2285_v47, %s2004_s10 }
 0x370   : > { %vm926_vm8 = vcmp.ne.s32.totalorder %v910_v13, 0  ;;  %v1027_v13 = vand.u32 4, %v2383_v31 }
 0x371   : > { %v758_v20 = vpop.permute.xlu0 %757 }
 0x372   : > { %v2389_v34 = vsel %vm815_vm12, %v758_v20, %v2272_v39  ;;  %v801_v20 = vand.u32 1, %v2462_v17 }
 0x373   : > { %769 = vrot.lane.b32.xlu1 %v2288_v49, %s2004_s10 }
 0x375   : > { %v764_v27 = vpop.permute.xlu0 %763 }
 0x376   : > { %v2386_v33 = vsel %vm818_vm11, %v764_v27, %v2276_v41  ;;  %v914_v27 = vand.u32 2, %v2362_v21 }
 0x377   : > { %885 = vrot.lane.b32.xlu1 %v2342_v12, %s2005_s18 }
 0x378   : > { %vm930_vm12 = vcmp.ne.s32.totalorder %v914_v27, 0 }
 0x37b   : > { %747 = vrot.lane.b32.xlu1 %v2270_v38, %s2004_s10 }
 0x37f   : > { %863 = vrot.lane.b32.xlu1 %v2348_v14, %s2005_s18 }
 0x3cd   : > { %v880_v32 = vpop.permute.xlu0 %879 }
 0x3ce   : > { %v2401_v41 = vsel %vm932_vm13, %v880_v32, %v2313_v61  ;;  %v1032_v61 = vand.u32 4, %v2311_v59  ;;  %v908_v59 = vand.u32 2, %v2337_v9  ;;  %v917_v32 = vand.u32 2, %v2398_v42 }
 0x3d0   : > { %vm1048_vm3 = vcmp.ne.s32.totalorder %v1032_v61, 0  ;;  %vm924_vm6 = vcmp.ne.s32.totalorder %v908_v59, 0 }
 0x3d1   : > { %v884_v45 = vpop.permute.xlu0 %883 }
 0x3d2   : > { %v2411_v50 = vsel %vm934_vm15, %v884_v45, %v2318_v0  ;;  %v795_v0 = vand.u32 1, %v2438_v62  ;;  %vm933_vm15 = vcmp.ne.s32.totalorder %v917_v32, 0 }
 0x3d4   : > { %vm811_vm5 = vcmp.ne.s32.totalorder %v795_v0, 0 }
 0x3d5   : > { %v888_v18 = vpop.permute.xlu1 %887 }
 0x3d6   : > { %v2357_v19 = vsel %vm936_vm9, %v888_v18, %v840_v3  ;;  %vm927_vm9 = vcmp.ne.s32.totalorder %v911_v15, 0 }
 0x3d7   : > { %999 = vrot.lane.b32.xlu0 %v2357_v19, %s2006_s30 }
 0x3d9   : > { %v756_v23 = vpop.permute.xlu1 %755 }
 0x3da   : > { %v2368_v24 = vsel %vm814_vm10, %v756_v23, %v2282_v46  ;;  %v805_v46 = vand.u32 1, %v2398_v42  ;;  %v1024_v23 = vand.u32 4, %v2323_v1  ;;  %vm817_vm10 = vcmp.ne.s32.totalorder %v801_v20, 0 }
 0x3db   : > { %749 = vrot.lane.b32.xlu0 %v2280_v44, %s2004_s10  ;;  %867 = vrot.lane.b32.xlu1 %v2368_v24, %s2005_s18  ;;  %v915_v1 = vand.u32 2, %v2383_v31 }
 0x3dc   : > { %vm821_vm1 = vcmp.ne.s32.totalorder %v805_v46, 0  ;;  %vm1040_vm11 = vcmp.ne.s32.totalorder %v1024_v23, 0 }
 0x3dd   : > { %v872_v28 = vpop.permute.xlu1 %871  ;;  %vm931_vm13 = vcmp.ne.s32.totalorder %v915_v1, 0 }
 0x3de   : > { %v2403_v39 = vsel %vm928_vm14, %v872_v28, %v832_v6  ;;  %v797_v6 = vand.u32 1, %v2443_v2  ;;  %vm1044_vm14 = vcmp.ne.s32.totalorder %v1028_v30, 0  ;;  %v1021_v30 = vand.u32 4, %v2443_v2 }
 0x3df   : > { %761 = vrot.lane.b32.xlu1 %v2278_v43, %s2004_s10  ;;  %753 = vrot.lane.b32.xlu0 %v2296_v52, %s2004_s10 }
 0x3e0   : > { %vm813_vm7 = vcmp.ne.s32.totalorder %v797_v6, 0 }
 0x3e1   : > { %v766_v35 = vpop.permute.xlu1 %765 }
 0x3e2   : > { %v2414_v51 = vsel %vm819_vm0, %v766_v35, %v2285_v47  ;;  %vm1046_vm0 = vcmp.ne.s32.totalorder %v1030_v55, 0 }
 0x3e3   : > { %875 = vrot.lane.b32.xlu1 %v2386_v33, %s2005_s18  ;;  %869 = vrot.lane.b32.xlu0 %v2389_v34, %s2005_s18 }
 0x3e5   : > { %v770_v48 = vpop.permute.xlu1 %769 }
 0x3e6   : > { %v2422_v56 = vsel %vm821_vm1, %v770_v48, %v2288_v49  ;;  %v2435_v49 = vadd.s32 8, %v2300_v54  ;;  %vm1047_vm1 = vcmp.ne.s32.totalorder %v1031_v37, 0  ;;  %v793_v48 = vand.u32 1, %v2300_v54 }
 0x3e7   : > { %991 = vrot.lane.b32.xlu1 %v2401_v41, %s2006_s30  ;;  %983 = vrot.lane.b32.xlu0 %v2403_v39, %s2006_s30 }
 0x3e8   : > { %v794_v63 = vand.u32 1, %v2435_v49 }
 0x3e9   : > { %v886_v58 = vpop.permute.xlu1 %885 }
 0x3ea   : > { %v2427_v47 = vsel %vm935_vm2, %v886_v58, %v2342_v12  ;;  %vm810_vm4 = vcmp.ne.s32.totalorder %v794_v63, 0  ;;  %vm809_vm2 = vcmp.ne.s32.totalorder %v793_v48, 0  ;;  %v907_v58 = vand.u32 2, %v2438_v62 }
 0x3eb   : > { %995 = vrot.lane.b32.xlu1 %v2411_v50, %s2006_s30  ;;  %877 = vrot.lane.b32.xlu0 %v2414_v51, %s2005_s18 }
 0x3ed   : > { %v748_v60 = vpop.permute.xlu1 %747 }
 0x3ee   : > { %v2450_v11 = vsel %vm810_vm4, %v748_v60, %v2270_v38  ;;  %vm923_vm4 = vcmp.ne.s32.totalorder %v907_v58, 0  ;;  %v909_v60 = vand.u32 2, %v2443_v2  ;;  %v1025_v2 = vand.u32 4, %v2462_v17 }
 0x3ef   : > { %881 = vrot.lane.b32.xlu0 %v2422_v56, %s2005_s18 }
 0x3f1   : > { %v864_v3 = vpop.permute.xlu1 %863 }
 0x3f3   : > { %997 = vrot.lane.b32.xlu0 %v2427_v47, %s2006_s30 }
 0x3f7   : > { %745 = vrot.lane.b32.xlu0 %v2274_v40, %s2004_s10 }
 0x449   : > { %v1000_v4 = vpop.permute.xlu0 %999 }
 0x44a   : > { %v1064_v5 = vsel %vm1048_vm3, %v1000_v4, %v2357_v19 }
 0x44b   : > { %1111 = vrot.lane.b32.xlu1 %v1064_v5, %s2007_s27 }
 0x44d   : > { %v750_v8 = vpop.permute.xlu0 %749  ;;  %v868_v10 = vpop.permute.xlu1 %867 }
 0x44e   : > { %v2453_v12 = vsel %vm811_vm5, %v750_v8, %v2280_v44  ;;  %v2465_v44 = vsel %vm924_vm6, %v864_v3, %v2348_v14  ;;  %v2477_v26 = vsel %vm926_vm8, %v868_v10, %v2368_v24  ;;  %vm925_vm6 = vcmp.ne.s32.totalorder %v909_v60, 0 }
 0x44f   : > { %859 = vrot.lane.b32.xlu1 %v2450_v11, %s2005_s18  ;;  %861 = vrot.lane.b32.xlu0 %v2453_v12, %s2005_s18  ;;  %v1023_v3 = vand.u32 4, %v2365_v22  ;;  %v913_v8 = vand.u32 2, %v2462_v17 }
 0x451   : > { %v762_v38 = vpop.permute.xlu1 %761  ;;  %v754_v18 = vpop.permute.xlu0 %753  ;;  %vm1039_vm8 = vcmp.ne.s32.totalorder %v1023_v3, 0 }
 0x452   : > { %v2468_v19 = vsel %vm813_vm7, %v754_v18, %v2296_v52  ;;  %v2489_v24 = vsel %vm817_vm10, %v762_v38, %v2278_v43 }
 0x453   : > { %975 = vrot.lane.b32.xlu1 %v2465_v44, %s2006_s30  ;;  %865 = vrot.lane.b32.xlu0 %v2468_v19, %s2005_s18 }
 0x455   : > { %v870_v25 = vpop.permute.xlu0 %869  ;;  %v876_v52 = vpop.permute.xlu1 %875 }
 0x456   : > { %v2480_v14 = vsel %vm927_vm9, %v870_v25, %v2389_v34  ;;  %v2498_v36 = vsel %vm930_vm12, %v876_v52, %v2386_v33  ;;  %vm929_vm9 = vcmp.ne.s32.totalorder %v913_v8, 0 }
 0x457   : > { %979 = vrot.lane.b32.xlu1 %v2477_v26, %s2006_s30  ;;  %981 = vrot.lane.b32.xlu0 %v2480_v14, %s2006_s30 }
 0x459   : > { %v984_v28 = vpop.permute.xlu0 %983  ;;  %v992_v34 = vpop.permute.xlu1 %991 }
 0x45a   : > { %v1056_v29 = vsel %vm1040_vm11, %v984_v28, %v2403_v39  ;;  %v1060_v45 = vsel %vm1044_vm14, %v992_v34, %v2401_v41  ;;  %vm1043_vm11 = vcmp.ne.s32.totalorder %v1027_v13, 0  ;;  %v1018_v28 = vand.u32 4, %v2435_v49 }
 0x45b   : > { %873 = vrot.lane.b32.xlu1 %v2489_v24, %s2005_s18  ;;  %1095 = vrot.lane.b32.xlu0 %v1056_v29, %s2007_s27 }
 0x45c   : > { %vm1034_vm14 = vcmp.ne.s32.totalorder %v1018_v28, 0 }
 0x45d   : > { %v878_v35 = vpop.permute.xlu0 %877  ;;  %v996_v46 = vpop.permute.xlu1 %995 }
 0x45e   : > { %v2501_v43 = vsel %vm931_vm13, %v878_v35, %v2414_v51  ;;  %v1062_v57 = vsel %vm1046_vm0, %v996_v46, %v2411_v50  ;;  %vm1037_vm0 = vcmp.ne.s32.totalorder %v1021_v30, 0 }
 0x45f   : > { %987 = vrot.lane.b32.xlu1 %v2498_v36, %s2006_s30  ;;  %989 = vrot.lane.b32.xlu0 %v2501_v43, %s2006_s30 }
 0x461   : > { %v882_v39 = vpop.permute.xlu0 %881 }
 0x462   : > { %v2511_v33 = vsel %vm933_vm15, %v882_v39, %v2422_v56  ;;  %v906_v56 = vand.u32 2, %v2435_v49 }
 0x463   : > { %1103 = vrot.lane.b32.xlu1 %v1060_v45, %s2007_s27  ;;  %993 = vrot.lane.b32.xlu0 %v2511_v33, %s2006_s30 }
 0x464   : > { %vm922_vm3 = vcmp.ne.s32.totalorder %v906_v56, 0 }
 0x465   : > { %v998_v51 = vpop.permute.xlu0 %997 }
 0x466   : > { %v1063_v7 = vsel %vm1047_vm1, %v998_v51, %v2427_v47  ;;  %v1020_v47 = vand.u32 4, %v2337_v9  ;;  %v1022_v9 = vand.u32 4, %v2354_v16  ;;  %vm1041_vm1 = vcmp.ne.s32.totalorder %v1025_v2, 0 }
 0x467   : > { %1107 = vrot.lane.b32.xlu1 %v1062_v57, %s2007_s27  ;;  %1221 = vrot.lane.b32.xlu0 %v1063_v7, %s2008_s6 }
 0x468   : > { %vm1036_vm5 = vcmp.ne.s32.totalorder %v1020_v47, 0  ;;  %vm1038_vm7 = vcmp.ne.s32.totalorder %v1022_v9, 0 }
 0x469   : > { %v746_v41 = vpop.permute.xlu0 %745 }
 0x46a   : > { %v2522_v53 = vsel %vm809_vm2, %v746_v41, %v2274_v40 }
 0x46b   : > { %857 = vrot.lane.b32.xlu0 %v2522_v53, %s2005_s18 }
 0x4bd   : > { %v1112_v50 = vpop.permute.xlu1 %1111 }
 0x4be   : > { %1223 = vrot.lane.b32.xlu1 %v1112_v50, %s2008_s6 }
 0x4c1   : > { %v860_v61 = vpop.permute.xlu1 %859  ;;  %v862_v63 = vpop.permute.xlu0 %861 }
 0x4c2   : > { %v2532_v40 = vsel %vm922_vm3, %v860_v61, %v2450_v11  ;;  %v2535_v0 = vsel %vm923_vm4, %v862_v63, %v2453_v12  ;;  %v1026_v12 = vand.u32 4, %v2362_v21 }
 0x4c3   : > { %971 = vrot.lane.b32.xlu1 %v2532_v40, %s2006_s30  ;;  %973 = vrot.lane.b32.xlu0 %v2535_v0, %s2006_s30 }
 0x4c4   : > { %vm1042_vm10 = vcmp.ne.s32.totalorder %v1026_v12, 0 }
 0x4c5   : > { %v976_v4 = vpop.permute.xlu1 %975  ;;  %v866_v5 = vpop.permute.xlu0 %865 }
 0x4c6   : > { %v1052_v59 = vsel %vm1036_vm5, %v976_v4, %v2465_v44  ;;  %v2545_v6 = vsel %vm925_vm6, %v866_v5, %v2468_v19  ;;  %v1029_v44 = vand.u32 4, %v2398_v42  ;;  %v905_v42 = vand.u32 2, %v2300_v54 }
 0x4c7   : > { %1087 = vrot.lane.b32.xlu1 %v1052_v59, %s2007_s27  ;;  %977 = vrot.lane.b32.xlu0 %v2545_v6, %s2006_s30 }
 0x4c8   : > { %vm1045_vm12 = vcmp.ne.s32.totalorder %v1029_v44, 0  ;;  %vm921_vm13 = vcmp.ne.s32.totalorder %v905_v42, 0 }
 0x4c9   : > { %v980_v10 = vpop.permute.xlu1 %979  ;;  %v982_v16 = vpop.permute.xlu0 %981 }
 0x4ca   : > { %v1054_v22 = vsel %vm1038_vm7, %v980_v10, %v2477_v26  ;;  %v1055_v11 = vsel %vm1039_vm8, %v982_v16, %v2480_v14 }
 0x4cb   : > { %1091 = vrot.lane.b32.xlu1 %v1054_v22, %s2007_s27  ;;  %1205 = vrot.lane.b32.xlu0 %v1055_v11, %s2008_s6 }
 0x4cd   : > { %v874_v15 = vpop.permute.xlu1 %873  ;;  %v1096_v38 = vpop.permute.xlu0 %1095 }
 0x4ce   : > { %v945_v18 = vsel %vm929_vm9, %v874_v15, %v2489_v24  ;;  %v1019_v24 = vand.u32 4, %v2438_v62 }
 0x4cf   : > { %985 = vrot.lane.b32.xlu0 %v945_v18, %s2006_s30  ;;  %1207 = vrot.lane.b32.xlu1 %v1096_v38, %s2008_s6 }
 0x4d0   : > { %vm1035_vm15 = vcmp.ne.s32.totalorder %v1019_v24, 0 }
 0x4d1   : > { %v988_v19 = vpop.permute.xlu1 %987  ;;  %v990_v20 = vpop.permute.xlu0 %989 }
 0x4d2   : > { %v1058_v23 = vsel %vm1042_vm10, %v988_v19, %v2498_v36  ;;  %v1059_v21 = vsel %vm1043_vm11, %v990_v20, %v2501_v43 }
 0x4d3   : > { %1099 = vrot.lane.b32.xlu1 %v1058_v23, %s2007_s27  ;;  %1213 = vrot.lane.b32.xlu0 %v1059_v21, %s2008_s6 }
 0x4d5   : > { %v1104_v31 = vpop.permute.xlu1 %1103  ;;  %v994_v25 = vpop.permute.xlu0 %993 }
 0x4d6   : > { %v1061_v26 = vsel %vm1045_vm12, %v994_v25, %v2511_v33 }
 0x4d7   : > { %1215 = vrot.lane.b32.xlu1 %v1104_v31, %s2008_s6  ;;  %1329 = vrot.lane.b32.xlu0 %v1061_v26, %s2009_s28 }
 0x4d9   : > { %v1108_v14 = vpop.permute.xlu1 %1107  ;;  %v1222_v52 = vpop.permute.xlu0 %1221 }
 0x4db   : > { %1331 = vrot.lane.b32.xlu1 %v1108_v14, %s2009_s28  ;;  %1333 = vrot.lane.b32.xlu0 %v1222_v52, %s2009_s28 }
 0x4dd   : > { %v858_v27 = vpop.permute.xlu0 %857 }
 0x4de   : > { %v937_v1 = vsel %vm921_vm13, %v858_v27, %v2522_v53  ;;  %v1017_v53 = vand.u32 4, %v2300_v54 }
 0x4df   : > { %969 = vrot.lane.b32.xlu0 %v937_v1, %s2006_s30 }
 0x4e0   : > { %vm1033_vm2 = vcmp.ne.s32.totalorder %v1017_v53, 0 }
 0x530   : > { %v1224_v29 = vpop.permute.xlu1 %1223 }
 0x531   : > { %1335 = vrot.lane.b32.xlu1 %v1224_v29, %s2009_s28 }
 0x535   : > { %v972_v32 = vpop.permute.xlu1 %971  ;;  %v974_v34 = vpop.permute.xlu0 %973 }
 0x536   : > { %v1050_v35 = vsel %vm1034_vm14, %v972_v32, %v2532_v40  ;;  %v1051_v36 = vsel %vm1035_vm15, %v974_v34, %v2535_v0 }
 0x537   : > { %1083 = vrot.lane.b32.xlu1 %v1050_v35, %s2007_s27  ;;  %1197 = vrot.lane.b32.xlu0 %v1051_v36, %s2008_s6 }
 0x539   : > { %v1088_v49 = vpop.permute.xlu1 %1087  ;;  %v978_v62 = vpop.permute.xlu0 %977 }
 0x53a   : > { %v1053_v43 = vsel %vm1037_vm0, %v978_v62, %v2545_v6 }
 0x53b   : > { %1199 = vrot.lane.b32.xlu1 %v1088_v49, %s2008_s6  ;;  %1313 = vrot.lane.b32.xlu0 %v1053_v43, %s2009_s28 }
 0x53d   : > { %v1092_v55 = vpop.permute.xlu1 %1091  ;;  %v1206_v37 = vpop.permute.xlu0 %1205 }
 0x53f   : > { %1315 = vrot.lane.b32.xlu1 %v1092_v55, %s2009_s28  ;;  %1317 = vrot.lane.b32.xlu0 %v1206_v37, %s2009_s28 }
 0x541   : > { %v1208_v39 = vpop.permute.xlu1 %1207  ;;  %v986_v45 = vpop.permute.xlu0 %985 }
 0x542   : > { %v1057_v33 = vsel %vm1041_vm1, %v986_v45, %v945_v18 }
 0x543   : > { %1319 = vrot.lane.b32.xlu1 %v1208_v39, %s2009_s28  ;;  %1433 = vrot.lane.b32.xlu0 %v1057_v33, %s2010_s13 }
 0x545   : > { %v1100_v46 = vpop.permute.xlu1 %1099  ;;  %v1214_v48 = vpop.permute.xlu0 %1213 }
 0x547   : > { %1435 = vrot.lane.b32.xlu1 %v1100_v46, %s2010_s13  ;;  %1437 = vrot.lane.b32.xlu0 %v1214_v48, %s2010_s13 }
 0x549   : > { %v1216_v51 = vpop.permute.xlu1 %1215  ;;  %v1330_v17 = vpop.permute.xlu0 %1329 }
 0x54b   : > { %1439 = vrot.lane.b32.xlu1 %v1216_v51, %s2010_s13  ;;  %1441 = vrot.lane.b32.xlu0 %v1330_v17, %s2010_s13 }
 0x54d   : > { %v1332_v57 = vpop.permute.xlu1 %1331  ;;  %v1334_v7 = vpop.permute.xlu0 %1333 }
 0x54f   : > { %1443 = vrot.lane.b32.xlu1 %v1332_v57, %s2010_s13  ;;  %1445 = vrot.lane.b32.xlu0 %v1334_v7, %s2010_s13 }
 0x551   : > { %v970_v56 = vpop.permute.xlu0 %969 }
 0x552   : > { %v1049_v50 = vsel %vm1033_vm2, %v970_v56, %v937_v1 }
 0x5a3   : > { %v1336_v41 = vpop.permute.xlu1 %1335 }
 0x5a4   : > { %1447 = vrot.lane.b32.xlu1 %v1336_v41, %s2010_s13 }
 0x5a9   : > { %v1084_v58 = vpop.permute.xlu1 %1083  ;;  %v1198_v60 = vpop.permute.xlu0 %1197 }
 0x5aa   : > { %v1513_v47 = vadd.f32 %v1084_v58, %v1049_v50 }
 0x5ac   : > { %v1514_v61 = vadd.f32 %v1513_v47, %v1198_v60 }
 0x5ad   : > { %v1200_v63 = vpop.permute.xlu1 %1199  ;;  %v1314_v0 = vpop.permute.xlu0 %1313 }
 0x5ae   : > { %v1515_v40 = vadd.f32 %v1514_v61, %v1200_v63 }
 0x5b0   : > { %v1516_v9 = vadd.f32 %v1515_v40, %v1314_v0 }
 0x5b1   : > { %v1316_v3 = vpop.permute.xlu1 %1315  ;;  %v1318_v5 = vpop.permute.xlu0 %1317 }
 0x5b2   : > { %v1517_v4 = vadd.f32 %v1516_v9, %v1316_v3 }
 0x5b4   : > { %v1518_v59 = vadd.f32 %v1517_v4, %v1318_v5 }
 0x5b5   : > { %v1320_v6 = vpop.permute.xlu1 %1319  ;;  %v1434_v10 = vpop.permute.xlu0 %1433 }
 0x5b6   : > { %v1519_v8 = vadd.f32 %v1518_v59, %v1320_v6 }
 0x5b8   : > { %v1520_v16 = vadd.f32 %v1519_v8, %v1434_v10 }
 0x5b9   : > { %v1436_v54 = vpop.permute.xlu1 %1435  ;;  %v1438_v11 = vpop.permute.xlu0 %1437 }
 0x5ba   : > { %v1521_v22 = vadd.f32 %v1520_v16, %v1436_v54 }
 0x5bc   : > { %v1522_v12 = vadd.f32 %v1521_v22, %v1438_v11 }
 0x5bd   : > { %v1440_v13 = vpop.permute.xlu1 %1439  ;;  %v1442_v38 = vpop.permute.xlu0 %1441 }
 0x5be   : > { %v1523_v15 = vadd.f32 %v1522_v12, %v1440_v13 }
 0x5c0   : > { %v1524_v18 = vadd.f32 %v1523_v15, %v1442_v38 }
 0x5c1   : > { %v1444_v44 = vpop.permute.xlu1 %1443  ;;  %v1446_v20 = vpop.permute.xlu0 %1445 }
 0x5c2   : > { %v1525_v19 = vadd.f32 %v1524_v18, %v1444_v44 }
 0x5c4   : > { %v1526_v23 = vadd.f32 %v1525_v19, %v1446_v20 }
 0x616   : > { %v1448_v21 = vpop.permute.xlu1 %1447 }
 0x617   : > { %v1527_v31 = vadd.f32 %v1526_v23, %v1448_v21 }
 0x619   : > { %v1528_v25 = vrot.slane %v1527_v31, 4 }
 0x61b   : > { %v1529_v26 = vadd.f32 %v1528_v25, %v1527_v31 }
 0x61d   : > { %v1530_v42 = vrot.slane %v1529_v26, 2 }
 0x61f   : > { %v1531_v14 = vadd.f32 %v1530_v42, %v1529_v26 }
 0x621   : > { %v1532_v52 = vrot.slane %v1531_v14, 1 }
 0x623   : > { %v1533_v27 = vadd.f32 %v1532_v52, %v1531_v14 }
 0x625   : > { %v1534_v1 = vmul.f32 128.0, %v1533_v27 }
 0x627   : > { %1535 = vst [vmem:[%s2197_s8] sm:$0x1] %v1534_v1 }
 0x628 PF: > { %s1679_s5 = sshll.u32 %s1986_s22, 4  ;;  %s1549_s7 = sshll.u32 %s2197_s8, 4  ;;  %s1550_s7 = int_to_ptr.vmem [resolvable:$true] %s1549_s7 }
 0x629   : > { %s2594_s29 = scalar_lea.hbm %s2657_s4, %s1679_s5  ;;  %s1537_s26 = scalar_lea.sflag [#allocation5], %s253_s20 }
 0x62a   : > { %s1876_s10 = scalar_lea.vmem %s1550_s7, 16  ;;  %p2673_p1 = scmp.ne.s32.totalorder %s2667_s11, 0 }
 0x62b   : > { %p1877_p10 = scmp.ne.s32.totalorder %s1550_s7, %s1876_s10  ;;  %s2011_s18 = smov [#allocation6]  }
 0x62c   : > { %s1880_s30 = sshll.u32 %s2011_s18, 4  ;;  %s1881_s30 = int_to_ptr.vmem [resolvable:$false] %s1880_s30 }
 0x62d   : > { %p1878_p8 = pnand %p1877_p10, %p2673_p1  ;;  %s1882_s27 = scalar_lea.vmem %s1881_s30, 32 }
 0x62e   : > { %p1883_p11 = scmp.lt.s32.totalorder %s1550_s7, %s1881_s30  ;;  %p1884_p13 = scmp.lt.s32.totalorder %s1882_s27, %s1876_s10 }
 0x62f   : > { %p1879_p9 = pneg %p1878_p8 }
 0x630   : > { %p1885_p0 = por %p1884_p13, %p1883_p11 }
 0x632   : > { %p1886_p5 = pnand %p1885_p0, %p1879_p9 }
 0x634   : > { %1889 = shalt.err (!%p1886_p5)
}
 0x635   : > { %s1890_s22 = scalar_lea.hbm %s2594_s29, 16  ;;  %s1894_s6 = scalar_lea.hbm %s2657_s4, 32 }
 0x636   : > { %p1891_p6 = scmp.ne.s32.totalorder %s2594_s29, %s1890_s22  ;;  %p1895_p2 = scmp.lt.u32.totalorder %s2594_s29, %s2657_s4 }
 0x637   : > { %p1896_p7 = scmp.lt.u32.totalorder %s1894_s6, %s1890_s22  ;;  %p1898_p10 = scmp.lt.u32.totalorder %s1890_s22, %s2594_s29 }
 0x638   : > { %p1892_p3 = pnand %p1891_p6, %p2673_p1 }
 0x639   : > { %p1897_p4 = por %p1896_p7, %p1895_p2 }
 0x63a   : > { %p1893_p12 = pneg %p1892_p3 }
 0x63b   : > { %p1899_p8 = por %p1898_p10, %p1897_p4 }
 0x63d   : > { %p1900_p9 = pnand %p1899_p8, %p1893_p12 }
 0x63f   : > { %1903 = shalt.err (!%p1900_p9)
}
 0x640   : > { %1736 = dma.vmem_to_hbm [thread:$0]  (%p2673_p1), %s1550_s7, 16, %s2594_s29, %s1537_s26  }
 0x641 PF: > { %p1747_p11 = scmp.ge.s32.totalorder %s1998_s25, 2  ;;  %s1561_s5 = sand.u32 1, %s1958_s15  }
 0x642   : > { %p2674_p13 = scmp.ne.s32.totalorder %s2669_s14, 0  ;;  %s1562_s9 = scalar_lea.sflag [#allocation5], %s1561_s5 }
 0x644   : > { %p1743_p0 = pnand %p1747_p11, %p2674_p13 }
 0x646   : > { %1953 = dma.done.wait (!%p1743_p0), %s1562_s9, 16  }
 0x647   : > { %1955 = vsyncadd (!%p1743_p0), %s1562_s9, 4294967280  ;;  %s20_s25 = sadd.s32 1, %s1998_s25   ;;  %s2675_s11 = sld [smem:[#allocation9_spill]] }
 0x648   : > { %p17_p5 = scmp.ge.s32.totalorder %s20_s25, 6   ;;  %s2676_s20 = sld [smem:[#allocation12_spill]] }
 0x649   : > { %s2677_s29 = sld [smem:[#allocation10_spill]]  ;;  %s2678_s7 = sld [smem:[#allocation11_spill]] }
 0x64a   : > { %s2679_s15 = smov %s1962_s16  ;;  %s2680_s16 = smov %s1966_s17 }
 0x64b   : > { %s2681_s17 = smov %s2124_s12  ;;  %s2682_s18 = smov %s1974_s19 }
 0x64c   : > { %s2684_s21 = smov %s1990_s23  ;;  %s2685_s22 = smov %s1994_s24 }
 0x64d   : > { %s2683_s19 = smov %s2675_s11  ;;  %19 = sbr.rel (!%p17_p5) target bundleno = 9 (0x9), region = 92 }
 0x64f   : > { %s2686_s23 = smov %s2677_s29  ;;  %s2687_s24 = smov %s2678_s7 }
 0x654   :  { %1566 = vsyncpa [#allocation4], 1 }
 0x655   :  { %1568 = vsyncpa [#allocation4 + $0x1], 1 }
 0x656   :  { %1569 = vsyncpa [#allocation5], 1 }
 0x657   :  { %1571 = vsyncpa [#allocation5 + $0x1], 1 }

</bundles_post_ra>
